<compile_context>
chip_gen: v6e
topology: v6e:2x2x1
jax: 0.10.0
libtpu: 0.0.40
codegen_flags: <defaults>
</compile_context>

<pallas_src>
import functools

import jax
import jax.numpy as jnp
from jax.experimental import pallas as pl
from jax.experimental.pallas import tpu as pltpu


_MAX_CLASS_TILE = 4096        # lanes per class chunk when tiling the vocab
_NEG = -1e30                  # finite "minus infinity" for padding / init
_F32_TEMP_BYTES = 6           # per-element allowance for transient f32 temps
_ROW_OVERHEAD_BYTES = 2560    # per-row: 3 f32 accumulators + (tb,1) targets
                              # (lane-padded to 128, targets double-buffered)


def _round_up(x, m):
    return ((x + m - 1) // m) * m


def _cdiv(a, b):
    return -(-a // b)


def _vmem_limit_bytes():
    """Generation-aware VMEM limit (<= ~75% of physical, clamped 32..96 MiB)."""
    phys = 64 * 1024 * 1024       # conservative fallback (v7x-sized)
    try:
        info = pltpu.get_tpu_info()
        phys = int(getattr(info, "vmem_capacity_bytes", phys) or phys)
    except Exception:
        pass
    return int(min(96 * 1024 * 1024, max(32 * 1024 * 1024, phys * 3 // 4)))


def _ce_kernel(logits_ref, targets_ref, loss_ref, m_sc, s_sc, f_sc, *,
               eps, num_classes, batch, block_rows, class_tile, class_padded):
    # logits_ref : (tb, tc) input dtype (f32 / bf16) in VMEM
    # targets_ref: (tb, 1) int32 in VMEM (resident across class chunks)
    # loss_ref   : (8, 128) f32 — per-row-tile partial sum, broadcast-filled
    # m_sc/s_sc/f_sc: (tb, 1) f32 running max / sum-exp / fused smoothing sum
    i = pl.program_id(0)          # batch row tile
    j = pl.program_id(1)          # class chunk (reduction axis, innermost)

    @pl.when(j == 0)
    def _init():
        m_sc[...] = jnp.full_like(m_sc, _NEG)
        s_sc[...] = jnp.zeros_like(s_sc)
        f_sc[...] = jnp.zeros_like(f_sc)

    x = logits_ref[...]           # (tb, tc), input dtype
    t = targets_ref[...]          # (tb, 1) int32

    # Online log-sum-exp: max in the input dtype (exact), f32 only inside exp.
    m_old = m_sc[...]
    m_new = jnp.maximum(
        m_old, jnp.max(x, axis=1, keepdims=True).astype(jnp.float32))
    s_sc[...] = s_sc[...] * jnp.exp(m_old - m_new) + jnp.sum(
        jnp.exp(x.astype(jnp.float32) - m_new), axis=1, keepdims=True)
    m_sc[...] = m_new

    # Fused smoothed cross term: sum_c w_c * x_c with
    #   w_c = eps/C + (1-eps)*[c == target], 0 on padded class columns.
    col = jax.lax.broadcasted_iota(jnp.int32, x.shape, 1) + j * class_tile
    eps_over_c = jnp.float32(eps / num_classes)
    w = jnp.where(col == t, jnp.float32(1.0 - eps) + eps_over_c, eps_over_c)
    if class_padded:
        w = jnp.where(col < num_classes, w, jnp.float32(0.0))
    f_sc[...] += jnp.sum(x.astype(jnp.float32) * w, axis=1, keepdims=True)

    # Epilogue on the last class chunk: per-row loss, mask padded rows, emit a
    # single lane-dense per-tile partial (broadcast across the whole block).
    @pl.when(j == pl.num_programs(1) - 1)
    def _finish():
        logz = m_sc[...] + jnp.log(s_sc[...])
        per_row = logz - f_sc[...]                                # (tb, 1) f32
        row = jax.lax.broadcasted_iota(jnp.int32, per_row.shape, 0) \
            + i * block_rows
        per_row = jnp.where(row < batch, per_row, 0.0)
        tile_sum = jnp.sum(per_row, axis=0, keepdims=True)        # (1, 1)
        loss_ref[...] = jnp.broadcast_to(tile_sum, loss_ref.shape)


def cross_entropy_loss(logits, targets, *, num_classes=None, label_smooth=True,
                       block_rows=None, class_tile=None):
    """logits: (B, C) float (f32/bf16); targets: (B,) int. Returns f32 scalar."""
    eps = 0.1 if label_smooth else 0.0
    B, C = logits.shape
    if num_classes is None:
        num_classes = C
    itemsize = jnp.dtype(logits.dtype).itemsize

    # ---- class-axis tiling (single full-width chunk for small/medium C) ----
    if class_tile is None:
        class_tile = _MAX_CLASS_TILE
    class_tile = int(class_tile)
    if class_tile >= C:
        tc, nct, Cp = C, 1, C                       # full class dim, no padding
    else:
        tc = max(128, (class_tile // 128) * 128)    # lane-aligned chunk
        if tc >= C:
            tc, nct, Cp = C, 1, C
        else:
            nct = _cdiv(C, tc)
            Cp = nct * tc
    class_padded = Cp != C

    # ---- VMEM budget -> batch row tile (no hard row cap) ----
    vmem_limit = _vmem_limit_bytes()
    work_budget = vmem_limit // 2                   # headroom for Mosaic/output
    row_bytes = tc * (2 * itemsize + _F32_TEMP_BYTES) + _ROW_OVERHEAD_BYTES
    if block_rows is None:
        tb = max(8, (int(work_budget // row_bytes) // 8) * 8)
        tb = min(tb, _round_up(B, 8))
        if B >= 16:                                 # >= 2 tiles for v7x megacore
            tb = min(tb, _round_up(_cdiv(B, 2), 8))
    else:
        tb = max(8, (int(block_rows) // 8) * 8)
        tb = min(tb, _round_up(B, 8))
    num_row_tiles = _cdiv(B, tb)
    tb = max(8, _round_up(_cdiv(B, num_row_tiles), 8))   # rebalance, min padding
    Bp = num_row_tiles * tb

    # ---- pad batch rows / class columns (masked inside the kernel) ----
    targets2d = targets.reshape(B, 1).astype(jnp.int32)
    if Bp != B or Cp != C:
        logits = jnp.pad(logits, ((0, Bp - B), (0, Cp - C)),
                         constant_values=_NEG)
    if Bp != B:
        targets2d = jnp.pad(targets2d, ((0, Bp - B), (0, 0)))

    kernel = functools.partial(
        _ce_kernel, eps=eps, num_classes=num_classes, batch=B,
        block_rows=tb, class_tile=tc, class_padded=class_padded)

    partials = pl.pallas_call(
        kernel,
        out_shape=jax.ShapeDtypeStruct((num_row_tiles * 8, 128), jnp.float32),
        grid=(num_row_tiles, nct),
        in_specs=[
            pl.BlockSpec((tb, tc), lambda i, j: (i, j)),   # logits chunk
            pl.BlockSpec((tb, 1), lambda i, j: (i, 0)),    # targets (resident)
        ],
        out_specs=pl.BlockSpec((8, 128), lambda i, j: (i, 0)),
        scratch_shapes=[pltpu.VMEM((tb, 1), jnp.float32)] * 3,
        compiler_params=pltpu.CompilerParams(
            dimension_semantics=("parallel", "arbitrary"),
            vmem_limit_bytes=vmem_limit,
        ),
    )(logits, targets2d)

    # Tiny cross-tile reduction + mean(0).sum() normalization in XLA.
    per_tile = partials.reshape(num_row_tiles, 8, 128)[:, 0, 0]
    return jnp.sum(per_tile) / jnp.float32(B)


def _reference(logits, targets, num_classes, eps):
    log_probs = jax.nn.log_softmax(logits.astype(jnp.float32), axis=1)
    y = jax.nn.one_hot(targets, num_classes, dtype=jnp.float32)
    y = (1.0 - eps) * y + eps / num_classes
    return jnp.sum(jnp.mean(-y * log_probs, axis=0))


if __name__ == "__main__":
    key = jax.random.PRNGKey(0)

    # Test 1: module-spec shape (batch=8, num_classes=32); single tile; with
    # and without label smoothing.
    k1, k2, key = jax.random.split(key, 3)
    B, C = 8, 32
    logits = jax.random.normal(k1, (B, C), dtype=jnp.float32)
    targets = jax.random.randint(k2, (B,), 0, C, dtype=jnp.int32)
    loss = jax.block_until_ready(
        cross_entropy_loss(logits, targets, num_classes=C, label_smooth=True))
    ref = _reference(logits, targets, C, eps=0.1)
    assert jnp.allclose(loss, ref, atol=1e-5, rtol=1e-5), (loss, ref)
    loss0 = jax.block_until_ready(
        cross_entropy_loss(logits, targets, num_classes=C, label_smooth=False))
    ref0 = _reference(logits, targets, C, eps=0.0)
    assert jnp.allclose(loss0, ref0, atol=1e-5, rtol=1e-5), (loss0, ref0)

    # Test 2: multiple row tiles + batch padding (B not a multiple of tile).
    k1, k2, key = jax.random.split(key, 3)
    B, C = 37, 96
    logits = jax.random.normal(k1, (B, C), dtype=jnp.float32)
    targets = jax.random.randint(k2, (B,), 0, C, dtype=jnp.int32)
    loss = jax.block_until_ready(
        cross_entropy_loss(logits, targets, num_classes=C, label_smooth=True,
                           block_rows=8))
    ref = _reference(logits, targets, C, eps=0.1)
    assert jnp.allclose(loss, ref, atol=1e-5, rtol=1e-5), (loss, ref)

    # Test 3: class-axis (online-softmax) tiling with class padding
    # (C=300 -> 3 chunks of 128) and multiple row tiles.
    k1, k2, key = jax.random.split(key, 3)
    B, C = 24, 300
    logits = jax.random.normal(k1, (B, C), dtype=jnp.float32)
    targets = jax.random.randint(k2, (B,), 0, C, dtype=jnp.int32)
    loss = jax.block_until_ready(
        cross_entropy_loss(logits, targets, num_classes=C, label_smooth=True,
                           block_rows=8, class_tile=128))
    ref = _reference(logits, targets, C, eps=0.1)
    assert jnp.allclose(loss, ref, atol=1e-5, rtol=1e-5), (loss, ref)

    print("KERNEL_OK")
</pallas_src>

<mosaic_0001>
module attributes {stable_mosaic.version = 11 : i64} {
  func.func @_ce_kernel(%arg0: i32, %arg1: i32, %arg2: memref<8x32xf32, #tpu.memory_space<vmem>>, %arg3: memref<8x1xi32, #tpu.memory_space<vmem>>, %arg4: memref<8x128xf32, #tpu.memory_space<vmem>>, %arg5: memref<8x1xf32, #tpu.memory_space<vmem>>, %arg6: memref<8x1xf32, #tpu.memory_space<vmem>>, %arg7: memref<8x1xf32, #tpu.memory_space<vmem>>) attributes {dimension_semantics = [#tpu.dimension_semantics<parallel>, #tpu.dimension_semantics<arbitrary>], iteration_bounds = array<i64: 1, 1>, scalar_prefetch = 0 : i64, scratch_operands = 3 : i64, tpu.core_type = #tpu.core_type<tc>, window_params = [{transform_indices = @transform_0, window_bounds = array<i64: 8, 32>}, {transform_indices = @transform_1, window_bounds = array<i64: 8, 1>}, {transform_indices = @transform_2, window_bounds = array<i64: 8, 128>}]} {
    %c0_i32 = arith.constant 0 : i32
    %0 = arith.cmpi eq, %arg1, %c0_i32 : i32
    %1 = arith.extui %0 : i1 to i32
    %c0_i32_0 = arith.constant 0 : i32
    %2 = arith.cmpi ne, %1, %c0_i32_0 : i32
    scf.if %2 {
      %cst_23 = arith.constant -1.000000e+30 : f32
      %40 = vector.broadcast %cst_23 : f32 to vector<8x1xf32>
      %c0_24 = arith.constant 0 : index
      %c0_25 = arith.constant 0 : index
      %41 = vector.load %arg5[%c0_24, %c0_25] : memref<8x1xf32, #tpu.memory_space<vmem>>, vector<8x1xf32>
      tpu.vector_store %arg5[%c0_24, %c0_25], %40 {strides = array<i32>} : memref<8x1xf32, #tpu.memory_space<vmem>>, vector<8x1xf32>,
      %cst_26 = arith.constant 0.000000e+00 : f32
      %42 = vector.broadcast %cst_26 : f32 to vector<8x1xf32>
      %c0_27 = arith.constant 0 : index
      %c0_28 = arith.constant 0 : index
      %43 = vector.load %arg6[%c0_27, %c0_28] : memref<8x1xf32, #tpu.memory_space<vmem>>, vector<8x1xf32>
      tpu.vector_store %arg6[%c0_27, %c0_28], %42 {strides = array<i32>} : memref<8x1xf32, #tpu.memory_space<vmem>>, vector<8x1xf32>,
      %cst_29 = arith.constant 0.000000e+00 : f32
      %44 = vector.broadcast %cst_29 : f32 to vector<8x1xf32>
      %c0_30 = arith.constant 0 : index
      %c0_31 = arith.constant 0 : index
      %45 = vector.load %arg7[%c0_30, %c0_31] : memref<8x1xf32, #tpu.memory_space<vmem>>, vector<8x1xf32>
      tpu.vector_store %arg7[%c0_30, %c0_31], %44 {strides = array<i32>} : memref<8x1xf32, #tpu.memory_space<vmem>>, vector<8x1xf32>,
    } else {
    }
    %c0 = arith.constant 0 : index
    %c0_1 = arith.constant 0 : index
    %3 = vector.load %arg2[%c0, %c0_1] : memref<8x32xf32, #tpu.memory_space<vmem>>, vector<8x32xf32>
    %c0_2 = arith.constant 0 : index
    %c0_3 = arith.constant 0 : index
    %4 = vector.load %arg3[%c0_2, %c0_3] : memref<8x1xi32, #tpu.memory_space<vmem>>, vector<8x1xi32>
    %c0_4 = arith.constant 0 : index
    %c0_5 = arith.constant 0 : index
    %5 = vector.load %arg5[%c0_4, %c0_5] : memref<8x1xf32, #tpu.memory_space<vmem>>, vector<8x1xf32>
    %cst = arith.constant dense<0xFF800000> : vector<8xf32>
    %6 = vector.multi_reduction <maximumf>, %3, %cst [1] : vector<8x32xf32> to vector<8xf32>
    %7 = vector.shape_cast %6 : vector<8xf32> to vector<8x1xf32>
    %8 = arith.maximumf %5, %7 : vector<8x1xf32>
    %c0_6 = arith.constant 0 : index
    %c0_7 = arith.constant 0 : index
    %9 = vector.load %arg6[%c0_6, %c0_7] : memref<8x1xf32, #tpu.memory_space<vmem>>, vector<8x1xf32>
    %10 = arith.subf %5, %8 : vector<8x1xf32>
    %11 = math.exp %10 : vector<8x1xf32>
    %12 = arith.mulf %9, %11 : vector<8x1xf32>
    %13 = vector.broadcast %8 : vector<8x1xf32> to vector<8x32xf32>
    %14 = arith.subf %3, %13 : vector<8x32xf32>
    %15 = math.exp %14 : vector<8x32xf32>
    %cst_8 = arith.constant dense<0.000000e+00> : vector<8xf32>
    %16 = vector.multi_reduction <add>, %15, %cst_8 [1] : vector<8x32xf32> to vector<8xf32>
    %17 = vector.shape_cast %16 : vector<8xf32> to vector<8x1xf32>
    %18 = arith.addf %12, %17 : vector<8x1xf32>
    %c0_9 = arith.constant 0 : index
    %c0_10 = arith.constant 0 : index
    %19 = vector.load %arg6[%c0_9, %c0_10] : memref<8x1xf32, #tpu.memory_space<vmem>>, vector<8x1xf32>
    tpu.vector_store %arg6[%c0_9, %c0_10], %18 {strides = array<i32>} : memref<8x1xf32, #tpu.memory_space<vmem>>, vector<8x1xf32>,
    %c0_11 = arith.constant 0 : index
    %c0_12 = arith.constant 0 : index
    %20 = vector.load %arg5[%c0_11, %c0_12] : memref<8x1xf32, #tpu.memory_space<vmem>>, vector<8x1xf32>
    tpu.vector_store %arg5[%c0_11, %c0_12], %8 {strides = array<i32>} : memref<8x1xf32, #tpu.memory_space<vmem>>, vector<8x1xf32>,
    %21 = tpu.iota {dimensions = array<i32: 1>} : vector<8x32xi32>
    %c32_i32 = arith.constant 32 : i32
    %22 = arith.muli %arg1, %c32_i32 : i32
    %23 = vector.broadcast %22 : i32 to vector<8x32xi32>
    %24 = arith.addi %21, %23 : vector<8x32xi32>
    %25 = vector.broadcast %4 : vector<8x1xi32> to vector<8x32xi32>
    %26 = arith.cmpi eq, %24, %25 : vector<8x32xi32>
    %cst_13 = arith.constant 0.899999976 : f32
    %cst_14 = arith.constant 3.125000e-03 : f32
    %27 = arith.addf %cst_13, %cst_14 : f32
    %cst_15 = arith.constant 3.125000e-03 : f32
    %28 = vector.broadcast %27 : f32 to vector<8x32xf32>
    %29 = vector.broadcast %cst_15 : f32 to vector<8x32xf32>
    %30 = arith.select %26, %28, %29 : vector<8x32xi1>, vector<8x32xf32>
    %c0_16 = arith.constant 0 : index
    %c0_17 = arith.constant 0 : index
    %31 = vector.load %arg7[%c0_16, %c0_17] : memref<8x1xf32, #tpu.memory_space<vmem>>, vector<8x1xf32>
    %32 = arith.mulf %3, %30 : vector<8x32xf32>
    %cst_18 = arith.constant dense<0.000000e+00> : vector<8xf32>
    %33 = vector.multi_reduction <add>, %32, %cst_18 [1] : vector<8x32xf32> to vector<8xf32>
    %34 = vector.shape_cast %33 : vector<8xf32> to vector<8x1xf32>
    %35 = arith.addf %31, %34 : vector<8x1xf32>
    %c0_19 = arith.constant 0 : index
    %c0_20 = arith.constant 0 : index
    %36 = vector.load %arg7[%c0_19, %c0_20] : memref<8x1xf32, #tpu.memory_space<vmem>>, vector<8x1xf32>
    tpu.vector_store %arg7[%c0_19, %c0_20], %35 {strides = array<i32>} : memref<8x1xf32, #tpu.memory_space<vmem>>, vector<8x1xf32>,
    %c0_i32_21 = arith.constant 0 : i32
    %37 = arith.cmpi eq, %arg1, %c0_i32_21 : i32
    %38 = arith.extui %37 : i1 to i32
    %c0_i32_22 = arith.constant 0 : i32
    %39 = arith.cmpi ne, %38, %c0_i32_22 : i32
    scf.if %39 {
      %c0_23 = arith.constant 0 : index
      %c0_24 = arith.constant 0 : index
      %40 = vector.load %arg5[%c0_23, %c0_24] : memref<8x1xf32, #tpu.memory_space<vmem>>, vector<8x1xf32>
      %c0_25 = arith.constant 0 : index
      %c0_26 = arith.constant 0 : index
      %41 = vector.load %arg6[%c0_25, %c0_26] : memref<8x1xf32, #tpu.memory_space<vmem>>, vector<8x1xf32>
      %42 = math.log %41 : vector<8x1xf32>
      %43 = arith.addf %40, %42 : vector<8x1xf32>
      %c0_27 = arith.constant 0 : index
      %c0_28 = arith.constant 0 : index
      %44 = vector.load %arg7[%c0_27, %c0_28] : memref<8x1xf32, #tpu.memory_space<vmem>>, vector<8x1xf32>
      %45 = arith.subf %43, %44 : vector<8x1xf32>
      %46 = tpu.iota {dimensions = array<i32: 0>} : vector<8x1xi32>
      %c8_i32 = arith.constant 8 : i32
      %47 = arith.muli %arg0, %c8_i32 : i32
      %48 = vector.broadcast %47 : i32 to vector<8x1xi32>
      %49 = arith.addi %46, %48 : vector<8x1xi32>
      %c8_i32_29 = arith.constant 8 : i32
      %50 = vector.broadcast %c8_i32_29 : i32 to vector<8x1xi32>
      %51 = arith.cmpi slt, %49, %50 : vector<8x1xi32>
      %cst_30 = arith.constant 0.000000e+00 : f32
      %52 = vector.broadcast %cst_30 : f32 to vector<8x1xf32>
      %53 = arith.select %51, %45, %52 : vector<8x1xi1>, vector<8x1xf32>
      %cst_31 = arith.constant dense<0.000000e+00> : vector<1xf32>
      %54 = vector.multi_reduction <add>, %53, %cst_31 [0] : vector<8x1xf32> to vector<1xf32>
      %55 = vector.shape_cast %54 : vector<1xf32> to vector<1x1xf32>
      %56 = vector.shape_cast %55 : vector<1x1xf32> to vector<1x1xf32>
      %57 = vector.broadcast %56 : vector<1x1xf32> to vector<8x128xf32>
      %c0_32 = arith.constant 0 : index
      %c0_33 = arith.constant 0 : index
      %58 = vector.load %arg4[%c0_32, %c0_33] : memref<8x128xf32, #tpu.memory_space<vmem>>, vector<8x128xf32>
      tpu.vector_store %arg4[%c0_32, %c0_33], %57 {strides = array<i32>} : memref<8x128xf32, #tpu.memory_space<vmem>>, vector<8x128xf32>,
    } else {
    }
    return
  }
  func.func @transform_0(%arg0: i32, %arg1: i32) -> (i32, i32) {
    %c0_i32 = arith.constant 0 : i32
    return %arg0, %arg1 : i32, i32
  }
  func.func @transform_1(%arg0: i32, %arg1: i32) -> (i32, i32) {
    %c0_i32 = arith.constant 0 : i32
    %c0_i32_0 = arith.constant 0 : i32
    return %arg0, %c0_i32 : i32, i32
  }
  func.func @transform_2(%arg0: i32, %arg1: i32) -> (i32, i32) {
    %c0_i32 = arith.constant 0 : i32
    %c0_i32_0 = arith.constant 0 : i32
    return %arg0, %c0_i32 : i32, i32
  }
}

</mosaic_0001>

<bundles_post_ra>
// kernel: tpu_custom_call.1
= control target key start
LH: loop header
LB: loop body
LE: loop exit
PB: predicated region body
PF: predicated region fallthrough
CT: control target
= control target key end

     0   :  { %vm23_vm0 = vcmask 261120   ;;  %s183_s0 = inlined_call_operand.vmem [shape: f32[8,32], index: 0, kind: input, shape index: {}]   ;;  %s184_s1 = inlined_call_operand.vmem [shape: s32[8,1], index: 1, kind: input, shape index: {}]   ;;  %s185_s2 = inlined_call_operand.hbm [shape: f32[8,128], index: 2, kind: output, shape index: {}]  }
   0x1   :  { %v20_v0 = vld [vmem:[%s183_s0] sm:$0xff] }
   0x2   :  { %7 = vsyncpa [#allocation6], 0  ;;  %v24_v1 = vsel %vm23_vm0, %v20_v0, -inf  ;;  %vm16_vm1 = vcmask 7168   ;;  %v144_v2 = vmov -1e+30   ;;  %v48_v13 = vlaneseq }
   0x3   :  { %25 = vmax.xlane.f32.xlu0 %v24_v1  ;;  %17 = vst.msk [vmem:[#allocation2] sm:$0xff] %vm16_vm1, %v144_v2  ;;  %v145_v3 = vmov 0   ;;  %v21_v4 = vld [vmem:[%s184_s1] sm:$0xff]  ;;  %v146_v5 = vmov 0.0   ;;  %v147_v16 = vmov 0.003125  }
   0x4   :  { %114 = vset.pattern.permute.xlu0 %v145_v3  ;;  %115 = vset.pattern.permute.xlu1 %v145_v3  ;;  %18 = vst.msk [vmem:[#allocation3] sm:$0xff] %vm16_vm1, %v146_v5  ;;  %19 = vst.msk [vmem:[#allocation4] sm:$0xff] %vm16_vm1, %v146_v5  ;;  %v49_v14 = vand.u32 127, %v48_v13  ;;  %s148_s0 = smov [#allocation5]  }
   0x5   :  { %54 = vperm.xlu1 %115, %v21_v4   ;;  %s101_s1 = sshll.u32 %s148_s0, 4  ;;  %s102_s1 = int_to_ptr.vmem [resolvable:$true] %s101_s1 }
   0x6   :  { %s122_s13 = scalar_lea.vmem %s102_s1, 128  ;;  %p127_p1 = scmp.lt.s32.totalorder %s102_s1, %s102_s1 }
   0x7   :  { %p123_p0 = scmp.ne.s32.totalorder %s102_s1, %s122_s13  ;;  %p128_p2 = scmp.lt.s32.totalorder %s122_s13, %s122_s13 }
   0x9   :  { %p129_p3 = por %p128_p2, %p127_p1 }
   0xa   :  { %v22_v6 = vld [vmem:[#allocation2] sm:$0xff] }
   0xb   :  { %v28_v24 = vld [vmem:[#allocation3] sm:$0xff]  ;;  %v58_v28 = vld [vmem:[#allocation4] sm:$0xff]  ;;  %p130_p4 = pnand %p129_p3, %p123_p0 }
  0x80   :  { %v55_v15 = vpop.permute.xlu1 %54 }
  0x81   :  { %vm56_vm2 = vcmp.eq.s32.totalorder %v49_v14, %v55_v15 }
  0x82   :  { %v57_v17 = vsel %vm56_vm2, 0.903125, %v147_v16 }
  0x83   :  { %v59_v18 = vmul.f32 %v57_v17, %v20_v0 }
  0x85   :  { %v60_v21 = vsel %vm23_vm0, %v59_v18, 0.0 }
  0x8c   :  { %v26_v7 = vpop.xlane.xlu0 %25 }
  0x8d   :  { %v27_v8 = vmax.f32 %v22_v6, %v26_v7 }
  0x8f   :  { %v29_v9 = vsub.f32 %v22_v6, %v27_v8  ;;  %47 = vst.msk [vmem:[#allocation2] sm:$0xff] %vm16_vm1, %v27_v8  ;;  %35 = vperm.xlu0 %114, %v27_v8  }
  0x91   :  { %v30_v22 = vmul.f32 1.442695, %v29_v9 }
  0x96   :  { %v68_v34 = vld [vmem:[#allocation2] sm:$0xff] }
 0x10a   :  { %v36_v10 = vpop.permute.xlu0 %35 }
 0x10b   :  { %v38_v11 = vsub.f32 %v20_v0, %v36_v10 }
 0x10d   :  { %v39_v12 = vmul.f32 1.442695, %v38_v11 }
 0x10f   :  { %116 = vpow2.f32 %v39_v12 }
 0x110   :  { %118 = vpow2.f32 %v30_v22 }
 0x11c   :  { %v117_v19 = vpop.eup %116 }
 0x11d   :  { %v41_v20 = vsel %vm23_vm0, %v117_v19, 0.0  ;;  %v119_v23 = vpop.eup %118 }
 0x11e   :  { %42 = vadd.xlane.f32.xlu1 %v41_v20  ;;  %v32_v25 = vmul.f32 %v119_v23, %v28_v24 }
 0x122   :  { %61 = vadd.xlane.f32.xlu1 %v60_v21 }
 0x1a7   :  { %v43_v26 = vpop.xlane.xlu1 %42 }
 0x1a8   :  { %v44_v27 = vadd.f32 %v43_v26, %v32_v25 }
 0x1aa   :  { %46 = vst.msk [vmem:[#allocation3] sm:$0xff] %vm16_vm1, %v44_v27 }
 0x1ab   :  { %v62_v29 = vpop.xlane.xlu1 %61 }
 0x1ac   :  { %v63_v30 = vadd.f32 %v62_v29, %v58_v28 }
 0x1ae   :  { %64 = vst.msk [vmem:[#allocation4] sm:$0xff] %vm16_vm1, %v63_v30 }
 0x1b1   :  { %v69_v31 = vld [vmem:[#allocation3] sm:$0xff] }
 0x1b2   :  { %120 = vlog2.f32 %v69_v31 }
 0x1b5   :  { %v73_v35 = vld [vmem:[#allocation4] sm:$0xff] }
 0x1bf   :  { %v121_v32 = vpop.eup %120 }
 0x1c0   :  { %v71_v33 = vmul.f32 0.6931472, %v121_v32 }
 0x1c2   :  { %v72_v36 = vadd.f32 %v71_v33, %v68_v34 }
 0x1c4   :  { %v74_v37 = vsub.f32 %v72_v36, %v73_v35 }
 0x1c6   :  { %v82_v38 = vsel %vm16_vm1, %v74_v37, 0.0 }
 0x1c7   :  { %v83_v39 = vrot.slane %v82_v38, 4 }
 0x1c9   :  { %v84_v40 = vadd.f32 %v83_v39, %v82_v38 }
 0x1cb   :  { %v85_v41 = vrot.slane %v84_v40, 2 }
 0x1cd   :  { %v86_v42 = vadd.f32 %v85_v41, %v84_v40 }
 0x1cf   :  { %v87_v43 = vrot.slane %v86_v42, 1 }
 0x1d1   :  { %v88_v44 = vadd.f32 %v87_v43, %v86_v42 }
 0x1d3   :  { %91 = vperm.xlu1 %115, %v88_v44  }
 0x24e   :  { %v92_v45 = vpop.permute.xlu1 %91 }
 0x24f   :  { %94 = vst [vmem:[#allocation5] sm:$0xff] %v92_v45 }
 0x250   :  { %133 = shalt.err (!%p130_p4)
}
 0x251   :  { %104 = dma.vmem_to_hbm [thread:$0]  %s102_s1, 128, %s185_s2, [#allocation6]  }
 0x252   :  { %142 = dma.done.wait [#allocation6], 128  }
 0x253   :  { %143 = vsyncadd [#allocation6], 4294967168 }
 0x254   :  { %108 = vsyncpa [#allocation6], 1 }

</bundles_post_ra>
